<compile_context>
chip_gen: v7x
topology: tpu7x:2x2x1
jax: 0.10.0
libtpu: 0.0.40
codegen_flags: <defaults>
</compile_context>

<pallas_src>
import functools
import math

import numpy as np
import jax
import jax.numpy as jnp
from jax import lax
from jax.experimental import pallas as pl
from jax.experimental.pallas import tpu as pltpu


def _round_up(x, m):
    return ((x + m - 1) // m) * m


def _strip_kernel(wt_ref, strip_ref, *, chunk, q_len, num_buckets,
                  max_distance, bidirectional):
    """Bias strip: strip[h, s] = weight[bucket(n), h] with n = (q_len-1) - s.

    s indexes the relative position d = k - q shifted by (q_len - 1), so the
    output row for query q is the contiguous slice strip[:, q_len-1-q :+ K].
    wt_ref    : (H, B) float32 transposed embedding table (resident)
    strip_ref : (H, chunk) float32 output chunk
    """
    s0 = pl.program_id(0) * chunk
    s = s0 + lax.broadcasted_iota(jnp.int32, (1, chunk), 1)
    n = (q_len - 1) - s                                   # n = q - k

    nb = num_buckets
    bucket = jnp.zeros_like(n)
    if bidirectional:
        nb //= 2
        bucket = bucket + (n < 0).astype(jnp.int32) * nb
        n = jnp.abs(n)
    else:
        n = jnp.maximum(n, 0)

    max_exact = nb // 2
    is_small = n < max_exact
    # Clamp so the masked-out (n < max_exact) lanes never see log(0) = -inf.
    nf = jnp.maximum(n.astype(jnp.float32), 1.0)
    # Same expression / evaluation order as the reference for exact parity.
    val_if_large = max_exact + (
        jnp.log(nf / max_exact) / math.log(max_distance / max_exact)
        * (nb - max_exact)).astype(jnp.int32)
    val_if_large = jnp.minimum(val_if_large, nb - 1)
    bucket = bucket + jnp.where(is_small, n, val_if_large)   # (1, chunk)

    # Embedding lookup as a one-hot MXU matmul: (H, B) @ (B, chunk).
    b_iota = lax.broadcasted_iota(jnp.int32, (num_buckets, chunk), 0)
    onehot = (bucket == b_iota).astype(jnp.float32)
    strip_ref[...] = jnp.dot(wt_ref[...], onehot,
                             preferred_element_type=jnp.float32)


def _expand_kernel(strip_ref, out_ref, *, tile_rows, q_len, k_pad):
    """Toeplitz row expansion: out[:, r*K_pad :+ K_pad] = strip[:, Q-1-q :+ K_pad].

    strip_ref : (H, S_pad) float32  resident bias strip
    out_ref   : (H, tile_rows * k_pad) float32 lane-dense output tile
    """
    q0 = pl.program_id(0) * tile_rows

    def emit(r):
        start = (q_len - 1) - (q0 + r)              # dynamic, unaligned (XLU)
        dst = r * k_pad
        if not isinstance(r, int):
            dst = pl.multiple_of(dst, 128)          # lane-aligned dense store
        out_ref[:, pl.ds(dst, k_pad)] = strip_ref[:, pl.ds(start, k_pad)]

    if tile_rows <= 16:
        for r in range(tile_rows):                  # fully static for small tiles
            emit(r)
    else:
        unroll = math.gcd(tile_rows, 8)
        def body(g, carry):
            base = g * unroll
            for j in range(unroll):                 # static inner unroll
                emit(base + j)
            return carry
        lax.fori_loop(0, tile_rows // unroll, body, 0)


def _pick_tile_rows(q_len, k_pad, num_heads, *, target_elems, vmem_budget_bytes):
    """Largest divisor t of q_len whose double-buffered (H, t*k_pad) f32 output
    tile fits the VMEM budget and lane-width target; prefers >= 2 grid steps so
    both v7x TensorCores get work."""
    def fits(t):
        return (t * k_pad <= target_elems
                and 2 * num_heads * t * k_pad * 4 <= vmem_budget_bytes)
    divisors = [t for t in range(1, q_len + 1) if q_len % t == 0 and fits(t)]
    if not divisors:
        return 1
    proper = [t for t in divisors if t < q_len]
    if q_len > 1 and proper:
        return max(proper)
    return max(divisors)


def t5_relative_position_bias(weight, query_length, key_length, *,
                              bidirectional=True, num_buckets=32,
                              max_distance=128, target_tile_elems=128 * 1024,
                              vmem_budget_bytes=40 * 1024 * 1024):
    """weight: (num_buckets, num_heads) float32 embedding table.

    Returns (1, num_heads, query_length, key_length) float32, matching
    `self.relative_attention_bias(bucket).permute(2, 0, 1).unsqueeze(0)`.
    """
    weight = jnp.asarray(weight, jnp.float32)
    num_heads = weight.shape[1]
    q_len, k_len = int(query_length), int(key_length)

    nb_eff = num_buckets // 2 if bidirectional else num_buckets
    if nb_eff // 2 < 1:
        raise ValueError("num_buckets too small for the T5 bucket scheme "
                         "(need >= 4 if bidirectional else >= 2).")

    # Pad K to a lane multiple so every store is dense and tiling never
    # degenerates; the padded lanes are sliced off at the end.
    k_pad = _round_up(k_len, 128)

    # --- 1. Prologue: bias strip over all Q+K-1 relative positions ----------
    s_need = q_len - 1 + k_pad
    strip_chunk = _round_up(s_need, 128) if s_need <= 2048 else 2048
    s_pad = _round_up(s_need, strip_chunk)
    wt = weight.T                                        # (H, B), tiny

    strip = pl.pallas_call(
        functools.partial(_strip_kernel, chunk=strip_chunk, q_len=q_len,
                          num_buckets=num_buckets, max_distance=max_distance,
                          bidirectional=bidirectional),
        out_shape=jax.ShapeDtypeStruct((num_heads, s_pad), jnp.float32),
        grid=(s_pad // strip_chunk,),
        in_specs=[pl.BlockSpec((num_heads, num_buckets), lambda i: (0, 0))],
        out_specs=pl.BlockSpec((num_heads, strip_chunk), lambda i: (0, i)),
        compiler_params=pltpu.CompilerParams(
            dimension_semantics=("parallel",)),
    )(wt)

    # --- 2. Output-streaming row expansion ----------------------------------
    tile_rows = _pick_tile_rows(q_len, k_pad, num_heads,
                                target_elems=target_tile_elems,
                                vmem_budget_bytes=vmem_budget_bytes)
    grid = (q_len // tile_rows,)
    tqk = tile_rows * k_pad

    vmem_need = (2 * num_heads * tqk * 4        # double-buffered output tile
                 + 2 * num_heads * s_pad * 4    # resident strip buffers
                 + (2 << 20))                   # headroom
    vmem_limit = int(min(max(vmem_need, 32 << 20), 48 << 20))

    out = pl.pallas_call(
        functools.partial(_expand_kernel, tile_rows=tile_rows, q_len=q_len,
                          k_pad=k_pad),
        out_shape=jax.ShapeDtypeStruct((num_heads, q_len * k_pad), jnp.float32),
        grid=grid,
        in_specs=[pl.BlockSpec((num_heads, s_pad), lambda i: (0, 0))],   # resident
        out_specs=pl.BlockSpec((num_heads, tqk), lambda i: (0, i)),
        compiler_params=pltpu.CompilerParams(
            dimension_semantics=("parallel",),
            vmem_limit_bytes=vmem_limit),
        cost_estimate=pl.CostEstimate(
            flops=0, transcendentals=0,
            bytes_accessed=4 * (num_heads * q_len * k_pad + num_heads * s_pad)),
    )(strip)

    # (H, Q*K_pad) -> (1, H, Q, K): contiguous reshape + cheap lane slice.
    out = out.reshape(num_heads, q_len, k_pad)
    if k_pad != k_len:
        out = out[:, :, :k_len]
    return out[None]


def _reference(weight, query_length, key_length, *, bidirectional=True,
               num_buckets=32, max_distance=128):
    """Pure-JAX reference mirroring the PyTorch module."""
    weight = jnp.asarray(weight, jnp.float32)
    q_pos = jnp.arange(query_length, dtype=jnp.int32)
    k_pos = jnp.arange(key_length, dtype=jnp.int32)
    relative_position = k_pos[None, :] - q_pos[:, None]
    n = -relative_position
    nb = num_buckets
    ret = jnp.zeros_like(n)
    if bidirectional:
        nb = nb // 2
        ret = ret + (n < 0).astype(jnp.int32) * nb
        n = jnp.abs(n)
    else:
        n = jnp.maximum(n, 0)
    max_exact = nb // 2
    is_small = n < max_exact
    nf = jnp.maximum(n.astype(jnp.float32), 1.0)
    val_if_large = max_exact + (
        jnp.log(nf / max_exact) / math.log(max_distance / max_exact)
        * (nb - max_exact)).astype(jnp.int32)
    val_if_large = jnp.minimum(val_if_large, nb - 1)
    bucket = ret + jnp.where(is_small, n, val_if_large)
    return weight[bucket].transpose(2, 0, 1)[None]


if __name__ == "__main__":
    key = jax.random.PRNGKey(0)
    num_buckets, num_heads, max_distance = 32, 8, 128
    # Deterministic "nn.Embedding(num_buckets, num_heads)" weight ~ N(0, 1).
    weight = jax.random.normal(key, (num_buckets, num_heads), dtype=jnp.float32)

    cases = [
        dict(q=16, k=16, bidirectional=True),    # 2 grid steps, static row loop
        dict(q=32, k=16, bidirectional=False),   # causal, rectangular Q != K
        dict(q=64, k=64, bidirectional=False),   # larger tile -> fori expansion
    ]
    for c in cases:
        out = t5_relative_position_bias(
            weight, c["q"], c["k"], bidirectional=c["bidirectional"],
            num_buckets=num_buckets, max_distance=max_distance)
        out = jax.block_until_ready(out)
        ref = _reference(weight, c["q"], c["k"],
                         bidirectional=c["bidirectional"],
                         num_buckets=num_buckets, max_distance=max_distance)
        assert out.shape == (1, num_heads, c["q"], c["k"]), out.shape
        np.testing.assert_allclose(np.asarray(out), np.asarray(ref),
                                   rtol=1e-6, atol=1e-6)

    print("KERNEL_OK")
</pallas_src>

<mosaic_0001>
module attributes {stable_mosaic.version = 11 : i64} {
  func.func @_strip_kernel(%arg0: i32, %arg1: memref<8x32xf32, #tpu.memory_space<vmem>>, %arg2: memref<8x256xf32, #tpu.memory_space<vmem>>) attributes {dimension_semantics = [#tpu.dimension_semantics<parallel>], iteration_bounds = array<i64: 1>, scalar_prefetch = 0 : i64, scratch_operands = 0 : i64, tpu.core_type = #tpu.core_type<tc>, window_params = [{pipeline_mode = #tpu.pipeline_mode<synchronous>, transform_indices = @transform_0, window_bounds = array<i64: 8, 32>}, {transform_indices = @transform_1, window_bounds = array<i64: 8, 256>}]} {
    %c256_i32 = arith.constant 256 : i32
    %0 = arith.muli %arg0, %c256_i32 : i32
    %1 = tpu.iota {dimensions = array<i32: 1>} : vector<1x256xi32>
    %2 = vector.broadcast %0 : i32 to vector<1x256xi32>
    %3 = arith.addi %2, %1 : vector<1x256xi32>
    %c15_i32 = arith.constant 15 : i32
    %4 = vector.broadcast %c15_i32 : i32 to vector<1x256xi32>
    %5 = arith.subi %4, %3 : vector<1x256xi32>
    %c0_i32 = arith.constant 0 : i32
    %6 = vector.broadcast %c0_i32 : i32 to vector<1x256xi32>
    %c0_i32_0 = arith.constant 0 : i32
    %7 = vector.broadcast %c0_i32_0 : i32 to vector<1x256xi32>
    %8 = arith.cmpi slt, %5, %7 : vector<1x256xi32>
    %9 = arith.extui %8 : vector<1x256xi1> to vector<1x256xi32>
    %c16_i32 = arith.constant 16 : i32
    %10 = vector.broadcast %c16_i32 : i32 to vector<1x256xi32>
    %11 = arith.muli %9, %10 : vector<1x256xi32>
    %12 = arith.addi %6, %11 : vector<1x256xi32>
    %13 = math.absi %5 : vector<1x256xi32>
    %c8_i32 = arith.constant 8 : i32
    %14 = vector.broadcast %c8_i32 : i32 to vector<1x256xi32>
    %15 = arith.cmpi slt, %13, %14 : vector<1x256xi32>
    %16 = arith.sitofp %13 : vector<1x256xi32> to vector<1x256xf32>
    %cst = arith.constant 1.000000e+00 : f32
    %17 = vector.broadcast %cst : f32 to vector<1x256xf32>
    %18 = arith.maximumf %16, %17 : vector<1x256xf32>
    %cst_1 = arith.constant 8.000000e+00 : f32
    %19 = vector.broadcast %cst_1 : f32 to vector<1x256xf32>
    %20 = arith.divf %18, %19 : vector<1x256xf32>
    %21 = math.log %20 : vector<1x256xf32>
    %cst_2 = arith.constant 2.77258873 : f32
    %22 = vector.broadcast %cst_2 : f32 to vector<1x256xf32>
    %23 = arith.divf %21, %22 : vector<1x256xf32>
    %cst_3 = arith.constant 8.000000e+00 : f32
    %24 = vector.broadcast %cst_3 : f32 to vector<1x256xf32>
    %25 = arith.mulf %23, %24 : vector<1x256xf32>
    %26 = arith.fptosi %25 : vector<1x256xf32> to vector<1x256xi32>
    %c8_i32_4 = arith.constant 8 : i32
    %27 = vector.broadcast %c8_i32_4 : i32 to vector<1x256xi32>
    %28 = arith.addi %27, %26 : vector<1x256xi32>
    %c15_i32_5 = arith.constant 15 : i32
    %29 = vector.broadcast %c15_i32_5 : i32 to vector<1x256xi32>
    %30 = arith.minsi %28, %29 : vector<1x256xi32>
    %31 = arith.select %15, %13, %30 : vector<1x256xi1>, vector<1x256xi32>
    %32 = arith.addi %12, %31 : vector<1x256xi32>
    %33 = tpu.iota {dimensions = array<i32: 0>} : vector<32x256xi32>
    %34 = vector.broadcast %32 : vector<1x256xi32> to vector<32x256xi32>
    %35 = arith.cmpi eq, %34, %33 : vector<32x256xi32>
    %36 = arith.extui %35 : vector<32x256xi1> to vector<32x256xi32>
    %37 = arith.sitofp %36 : vector<32x256xi32> to vector<32x256xf32>
    %c0 = arith.constant 0 : index
    %c0_6 = arith.constant 0 : index
    %38 = vector.load %arg1[%c0, %c0_6] : memref<8x32xf32, #tpu.memory_space<vmem>>, vector<8x32xf32>
    %cst_7 = arith.constant dense<0.000000e+00> : vector<8x256xf32>
    %39 = tpu.matmul %38, %37, %cst_7 {dimension_numbers = #tpu.dot_dimension_numbers<[1], [0], [0], [1], [0, 0, 1, 1], [], []>} : vector<8x32xf32>, vector<32x256xf32>, vector<8x256xf32> -> vector<8x256xf32>
    %c0_8 = arith.constant 0 : index
    %c0_9 = arith.constant 0 : index
    %40 = vector.load %arg2[%c0_8, %c0_9] : memref<8x256xf32, #tpu.memory_space<vmem>>, vector<8x256xf32>
    tpu.vector_store %arg2[%c0_8, %c0_9], %39 {strides = array<i32>} : memref<8x256xf32, #tpu.memory_space<vmem>>, vector<8x256xf32>,
    return
  }
  func.func @transform_0(%arg0: i32) -> (i32, i32) {
    %c0_i32 = arith.constant 0 : i32
    %c0_i32_0 = arith.constant 0 : i32
    %c0_i32_1 = arith.constant 0 : i32
    return %c0_i32, %c0_i32_0 : i32, i32
  }
  func.func @transform_1(%arg0: i32) -> (i32, i32) {
    %c0_i32 = arith.constant 0 : i32
    %c0_i32_0 = arith.constant 0 : i32
    return %c0_i32, %arg0 : i32, i32
  }
}

</mosaic_0001>

<bundles_post_ra>
// kernel: tpu_custom_call.1
= control target key start
LH: loop header
LB: loop body
LE: loop exit
PB: predicated region body
PF: predicated region fallthrough
CT: control target
= control target key end

     0   :  { %6 = vsyncpa [#allocation3], 0  ;;  %s318_s0 = inlined_call_operand.hbm [shape: f32[8,32], index: 0, kind: input, shape index: {}]   ;;  %s319_s1 = inlined_call_operand.hbm [shape: f32[8,256], index: 1, kind: output, shape index: {}]  }
   0x1   :  { %7 = vsyncpa [#allocation4], 0  ;;  %s279_s6 = smov [#allocation2]   ;;  %s231_s10 = scalar_lea.hbm %s318_s0, 128 }
   0x2   :  { %s14_s7 = sshll.u32 %s279_s6, 4  ;;  %p232_p0 = scmp.ne.s32.totalorder %s318_s0, %s231_s10  ;;  %s15_s7 = int_to_ptr.vmem [resolvable:$true] %s14_s7 }
   0x3   :  { %p235_p1 = scmp.lt.u32.totalorder %s231_s10, %s318_s0 }
   0x5   :  { %p237_p2 = pnand %p235_p1, %p232_p0 }
   0x7   :  { %240 = shalt.err (!%p237_p2)
}
   0x8   :  { %s241_s15 = scalar_lea.vmem %s15_s7, 128  ;;  %p246_p4 = scmp.lt.s32.totalorder %s15_s7, %s15_s7 }
   0x9   :  { %p242_p3 = scmp.ne.s32.totalorder %s15_s7, %s241_s15  ;;  %p247_p5 = scmp.lt.s32.totalorder %s241_s15, %s241_s15 }
   0xb   :  { %p248_p6 = por %p247_p5, %p246_p4 }
   0xd   :  { %p249_p7 = pnand %p248_p6, %p242_p3 }
   0xf   :  { %252 = shalt.err (!%p249_p7)
}
  0x10   :  { %17 = dma.hbm_to_vmem [thread:$0]  %s318_s0, 128, %s15_s7, [#allocation3]  }
  0x11   :  { %275 = dma.done.wait [#allocation3], 128  }
  0x12   :  { %276 = vsyncadd [#allocation3], 4294967168  ;;  %v22_v0 = vlaneseq  ;;  %v280_v1 = vmov 0.0   ;;  %v281_v27 = vmov 0   ;;  %v282_v41 = vmov 1.0|1.0  }
  0x13   :  { %168 = vmatprep.mubr.f32.mxu0 %v280_v1  ;;  %v99_v42 = vld [vmem:[#allocation2] sm:$0xff]  ;;  %s283_s0 = smov [#allocation5]  }
  0x14   :  { %v23_v2 = vand.u32 127, %v22_v0  ;;  %v71_v24 = vshrl.u32 %v22_v0, 7  ;;  %s183_s18 = sshll.u32 %s283_s0, 4  ;;  %s184_s18 = int_to_ptr.vmem [resolvable:$true] %s183_s18 }
  0x15   :  { %s253_s19 = scalar_lea.vmem %s184_s18, 256  ;;  %p258_p9 = scmp.lt.s32.totalorder %s184_s18, %s184_s18 }
  0x16   :  { %v24_v3 = vadd.s32 128, %v23_v2  ;;  %v28_v4 = vsub.s32 15, %v23_v2  ;;  %v72_v31 = vadd.s32 8, %v71_v24  ;;  %v73_v34 = vadd.s32 16, %v71_v24  ;;  %p254_p8 = scmp.ne.s32.totalorder %s184_s18, %s253_s19  ;;  %p259_p10 = scmp.lt.s32.totalorder %s253_s19, %s253_s19 }
  0x17   :  { %v74_v36 = vadd.s32 24, %v71_v24 }
  0x18   :  { %v29_v5 = vsub.s32 15, %v24_v3  ;;  %v36_v6 = vsub.s32 0, %v28_v4  ;;  %vm30_vm0 = vcmp.lt.s32.totalorder %v28_v4, 0  ;;  %p260_p11 = por %p259_p10, %p258_p9 }
  0x19   :  { %v32_v28 = vsel %vm30_vm0, 1, %v281_v27  ;;  %vm100_vm0 = vcmask 261120  }
  0x1a   :  { %v38_v7 = vsub.s32 0, %v29_v5  ;;  %v192_v8 = vmin.u32 %v36_v6, %v28_v4  ;;  %v34_v33 = vmul.u32 16, %v32_v28  ;;  %p261_p12 = pnand %p260_p11, %p254_p8 }
  0x1c   :  { %v43_v9 = vcvt.s32.f32 %v38_v7  ;;  %v42_v10 = vcvt.s32.f32 %v192_v8  ;;  %vm40_vm2 = vcmp.lt.s32.totalorder %v192_v8, 8 }
  0x1e   :  { %v45_v11 = vmax.f32 %v43_v9, 1.0  ;;  %v44_v12 = vmax.f32 %v42_v10, 1.0 }
  0x20   :  { %v48_v13 = vmul.f32 0.125, %v45_v11  ;;  %v47_v14 = vmul.f32 0.125, %v44_v12 }
  0x22   :  { %227 = vlog2.f32 %v48_v13 }
  0x23   :  { %229 = vlog2.f32 %v47_v14 }
  0x2c   :  { %v228_v15 = vpop.eup %227 }
  0x2d   :  { %v230_v16 = vpop.eup %229  ;;  %v52_v17 = vmul.f32 0.6931472, %v228_v15 }
  0x2e   :  { %v50_v18 = vmul.f32 0.6931472, %v230_v16 }
  0x2f   :  { %v55_v19 = vmul.f32 0.36067376, %v52_v17 }
  0x30   :  { %v54_v20 = vmul.f32 0.36067376, %v50_v18 }
  0x31   :  { %v57_v21 = vmul.f32 8.0, %v55_v19 }
  0x32   :  { %v56_v22 = vmul.f32 8.0, %v54_v20 }
  0x33   :  { %v220_v23 = vtrunc.f32 %v57_v21 }
  0x34   :  { %v218_v25 = vtrunc.f32 %v56_v22 }
  0x35   :  { %v221_v26 = vcvt.f32.s32 %v220_v23 }
  0x36   :  { %v219_v29 = vcvt.f32.s32 %v218_v25 }
  0x37   :  { %v61_v30 = vadd.s32 8, %v221_v26 }
  0x38   :  { %v60_v32 = vadd.s32 8, %v219_v29 }
  0x39   :  { %vm64_vm1 = vcmp.lt.s32.totalorder %v61_v30, 15 }
  0x3a   :  { %v65_v35 = vsel %vm64_vm1, %v61_v30, 15  ;;  %vm62_vm3 = vcmp.lt.s32.totalorder %v60_v32, 15 }
  0x3b   :  { %v69_v37 = vadd.s32 16, %v65_v35  ;;  %v63_v38 = vsel %vm62_vm3, %v60_v32, 15 }
  0x3c   :  { %v66_v39 = vsel %vm40_vm2, %v192_v8, %v63_v38 }
  0x3d   :  { %vm76_vm4 = vcmp.eq.s32.totalorder %v69_v37, %v71_v24  ;;  %vm78_vm5 = vcmp.eq.s32.totalorder %v69_v37, %v72_v31  ;;  %v68_v40 = vadd.s32 %v66_v39, %v34_v33  ;;  %vm80_vm6 = vcmp.eq.s32.totalorder %v69_v37, %v73_v34 }
  0x3e   :  { %vm210_vm7 = vmpackc.low %vm78_vm5, %vm76_vm4  ;;  %vm82_vm8 = vcmp.eq.s32.totalorder %v69_v37, %v74_v36 }
  0x3f   :  { %211 = vmatprep.subr.msk.bf16.mxu0 %vm210_vm7, %v282_v41  ;;  %vm75_vm9 = vcmp.eq.s32.totalorder %v68_v40, %v71_v24  ;;  %vm77_vm10 = vcmp.eq.s32.totalorder %v68_v40, %v72_v31  ;;  %vm214_vm11 = vmpackc.low %vm82_vm8, %vm80_vm6  ;;  %vm79_vm12 = vcmp.eq.s32.totalorder %v68_v40, %v73_v34  ;;  %vm81_vm13 = vcmp.eq.s32.totalorder %v68_v40, %v74_v36 }
  0x40   :  { %vm212_vm14 = vmpackc.low %vm77_vm10, %vm75_vm9 }
  0x41   :  { %213 = vmatpush1.bf16.msk.msra.mxu0 %vm212_vm14, %v282_v41  ;;  %vm216_vm15 = vmpackc.low %vm81_vm13, %vm79_vm12 }
  0x42   :  { %215 = vmatprep.subr.msk.bf16.mxu0 %vm214_vm11, %v282_v41 }
  0x45   :  { %217 = vmatpush1.bf16.msk.msra.mxu0 %vm216_vm15, %v282_v41 }
  0x48   :  { %209 = vmatmul.mubr.msk.f32.vlgmr.msra.gmra.mrb[0].mxu0 %vm100_vm0, %v99_v42 }
 0x11b   :  { %v170_v43 = vpop.f32.mrb[0].mxu0 }
 0x11c   :  { %175 = vst [vmem:[#allocation5] sm:$0xff] %v170_v43  ;;  %v172_v44 = vpop.f32.mrb[1].mxu0 }
 0x11d   :  { %176 = vst [vmem:[#allocation5 + $0x8] sm:$0xff] %v172_v44 }
 0x11e   :  { %264 = shalt.err (!%p261_p12)
}
 0x11f   :  { %s265_s22 = scalar_lea.hbm %s319_s1, 256 }
 0x120   :  { %p266_p13 = scmp.ne.s32.totalorder %s319_s1, %s265_s22  ;;  %p269_p0 = scmp.lt.u32.totalorder %s265_s22, %s319_s1 }
 0x122   :  { %p271_p1 = pnand %p269_p0, %p266_p13 }
 0x124   :  { %274 = shalt.err (!%p271_p1)
}
 0x125   :  { %186 = dma.vmem_to_hbm [thread:$0]  %s184_s18, 256, %s319_s1, [#allocation4]  }
 0x126   :  { %277 = dma.done.wait [#allocation4], 256  }
 0x127   :  { %278 = vsyncadd [#allocation4], 4294967040 }
 0x128   :  { %190 = vsyncpa [#allocation3], 1 }
 0x129   :  { %191 = vsyncpa [#allocation4], 1 }

</bundles_post_ra>
